<compile_context>
chip_gen: v7x
topology: tpu7x:2x2x1
jax: 0.10.0
libtpu: 0.0.40
codegen_flags: <defaults>
</compile_context>

<pallas_src>
import functools

import jax
import jax.numpy as jnp
import numpy as np
from jax.experimental import pallas as pl
from jax.experimental.pallas import tpu as pltpu

LANE = 128      # output channels padded to a multiple of the lane width
SUBLANE = 8     # GEMM K dim padded to a multiple of the sublane width


def _round_up(x, m):
    return (x + m - 1) // m * m


# ------------------------- Pallas kernel (hot path) --------------------------

def _tap_conv_kernel(*refs, taps, relu, has_res):
    """Fused multi-tap conv + BN-shift (+ residual) (+ ReLU).

    refs = (x_ref, w_ref, shift_ref[, res_ref], o_ref)
      x_ref    : (1, Hin, Win, Cin)   bf16 padded image (resident per image n)
      w_ref    : (T, Cin, Coutp)      bf16, BN scale pre-folded into columns
      shift_ref: (1, Coutp)           f32 per-channel BN shift
      res_ref  : (1, th, Wo, Coutp)   bf16 residual (optional)
      o_ref    : (1, th, Wo, Coutp)
    out[r, w, :] = act( sum_t x[r + dh_t, w + dw_t, :] @ W_t + shift (+ res) )
    """
    if has_res:
        x_ref, w_ref, shift_ref, res_ref, o_ref = refs
    else:
        x_ref, w_ref, shift_ref, o_ref = refs
        res_ref = None
    _, th, wo, coutp = o_ref.shape
    cin = x_ref.shape[3]
    row0 = pl.program_id(1) * th

    acc = jnp.zeros((th * wo, coutp), jnp.float32)
    for t, (dh, dw) in enumerate(taps):
        patch = x_ref[pl.ds(0, 1), pl.ds(row0 + dh, th), pl.ds(dw, wo), :]
        acc = acc + jnp.dot(patch.reshape(th * wo, cin), w_ref[t],
                            preferred_element_type=jnp.float32)

    out = acc + shift_ref[...]                              # f32 epilogue
    if has_res:
        out = out + res_ref[...].reshape(th * wo, coutp).astype(jnp.float32)
    if relu:
        out = jnp.maximum(out, 0.0)
    o_ref[...] = out.reshape(1, th, wo, coutp).astype(o_ref.dtype)


def _pick_row_block(ho, wo, target_rows=512):
    # Largest divisor of Ho whose block gives <= target_rows GEMM rows per step.
    best = 1
    for th in range(1, ho + 1):
        if ho % th == 0 and th * wo <= target_rows:
            best = th
    return best


def _tap_conv(xin, w_taps, shift, taps, ho, wo, *, relu, residual=None,
              out_dtype=jnp.bfloat16):
    n, hin, win, cin = xin.shape
    t, kdim, coutp = w_taps.shape
    assert kdim == cin and t == len(taps)
    th = _pick_row_block(ho, wo)
    grid = (n, ho // th)

    def build(resident_kw):
        in_specs = [
            pl.BlockSpec((1, hin, win, cin), lambda i, j: (i, 0, 0, 0)),
            pl.BlockSpec((t, kdim, coutp), lambda i, j: (0, 0, 0), **resident_kw),
            pl.BlockSpec((1, coutp), lambda i, j: (0, 0), **resident_kw),
        ]
        args = [xin, w_taps, shift]
        if residual is not None:
            in_specs.append(pl.BlockSpec((1, th, wo, coutp),
                                         lambda i, j: (i, j, 0, 0)))
            args.append(residual)
        kernel = functools.partial(_tap_conv_kernel, taps=tuple(taps), relu=relu,
                                   has_res=residual is not None)
        call = pl.pallas_call(
            kernel,
            out_shape=jax.ShapeDtypeStruct((n, ho, wo, coutp), out_dtype),
            grid=grid,
            in_specs=in_specs,
            out_specs=pl.BlockSpec((1, th, wo, coutp), lambda i, j: (i, j, 0, 0)),
            compiler_params=pltpu.CompilerParams(
                dimension_semantics=("parallel", "parallel"),
                vmem_limit_bytes=32 * 1024 * 1024),
        )
        return call(*args)

    try:
        # Weights / shift have constant index_maps: single-buffer them so they stay
        # resident without doubling their VMEM footprint.
        return build({"pipeline_mode": pl.Buffered(1)})
    except Exception:  # pragma: no cover — JAX build without Buffered(1) support
        return build({})


# ------------------------------ host-side glue --------------------------------

def _fold_bn(gamma, beta, mean, var, eps=1e-5):
    scale = gamma / jnp.sqrt(var + eps)
    shift = beta - mean * scale
    return scale, shift


def _pad_shift(shift, coutp):
    return jnp.pad(shift, (0, coutp - shift.shape[0])).reshape(1, coutp).astype(jnp.float32)


def _phase_conv3x3_inputs(x, w_oihw, scale, stride, ho, wo, coutp):
    """3x3 conv (pad=1, any stride) -> stride-1 multi-tap conv inputs.

    For stride s, the spatially-padded input is split into s*s phases stacked along
    the channel dim (same total bytes — no im2col blow-up) so the kernel only does
    unit-stride reads; the weights are rearranged to match.  s=1 is the identity
    rearrangement (9 taps, original channels).  BN scale is folded into the weights.
    """
    n, _, _, cin = x.shape
    cout = w_oihw.shape[0]
    s = stride
    dmax = 2 // s                         # tap offsets 0..dmax per spatial axis
    hin, win = ho + dmax, wo + dmax

    xp = jnp.pad(x, ((0, 0), (1, 1), (1, 1), (0, 0)))
    phases = []
    for pi in range(s):
        for pj in range(s):
            ph = xp[:, pi::s, pj::s, :][:, :hin, :win, :]
            ph = jnp.pad(ph, ((0, 0), (0, hin - ph.shape[1]),
                              (0, win - ph.shape[2]), (0, 0)))
            phases.append(ph)
    xin = jnp.concatenate(phases, axis=-1)                 # (n, hin, win, s*s*cin)
    k = s * s * cin
    kp = _round_up(k, SUBLANE)
    xin = jnp.pad(xin, ((0, 0), (0, 0), (0, 0), (0, kp - k))).astype(jnp.bfloat16)

    w_hwio = jnp.transpose(w_oihw, (2, 3, 1, 0))           # (3, 3, cin, cout)
    taps, w_list = [], []
    for di in range(dmax + 1):
        for dj in range(dmax + 1):
            blocks = []
            for pi in range(s):
                for pj in range(s):
                    i, j = s * di + pi, s * dj + pj
                    if i < 3 and j < 3:
                        blocks.append(w_hwio[i, j])
                    else:
                        blocks.append(jnp.zeros((cin, cout), w_hwio.dtype))
            wt = jnp.concatenate(blocks, axis=0) * scale[None, :]   # (k, cout)
            wt = jnp.pad(wt, ((0, kp - k), (0, coutp - cout)))
            w_list.append(wt)
            taps.append((di, dj))
    w_taps = jnp.stack(w_list, axis=0).astype(jnp.bfloat16)
    return xin, w_taps, taps


def _shortcut_proj(x, w_oihw, scale, shift, stride, ho, wo, coutp):
    # 1x1 strided conv + bn, as a single-tap fused kernel on the subsampled input.
    n, _, _, cin = x.shape
    cout = w_oihw.shape[0]
    cinp = _round_up(cin, SUBLANE)
    xs = x[:, ::stride, ::stride, :]
    xs = jnp.pad(xs, ((0, 0), (0, 0), (0, 0), (0, cinp - cin))).astype(jnp.bfloat16)
    wsc = jnp.transpose(w_oihw[:, :, 0, 0]) * scale[None, :]        # (cin, cout)
    wsc = jnp.pad(wsc, ((0, cinp - cin), (0, coutp - cout)))[None].astype(jnp.bfloat16)
    return _tap_conv(xs, wsc, _pad_shift(shift, coutp), [(0, 0)], ho, wo,
                     relu=False, out_dtype=jnp.bfloat16)


def basic_block_forward(x_nchw, params, stride):
    x = jnp.transpose(x_nchw, (0, 2, 3, 1))                # NCHW -> NHWC (f32)
    n, h, w, cin = x.shape
    cout = params["w1"].shape[0]
    coutp = _round_up(cout, LANE)
    ho = (h - 1) // stride + 1
    wo = (w - 1) // stride + 1

    s1, b1 = _fold_bn(*params["bn1"])
    s2, b2 = _fold_bn(*params["bn2"])

    # conv1 (3x3, stride, pad=1) + bn1 + relu — fused, intermediate kept in bf16
    xin1, w1, taps1 = _phase_conv3x3_inputs(x, params["w1"], s1, stride, ho, wo, coutp)
    out1 = _tap_conv(xin1, w1, _pad_shift(b1, coutp), taps1, ho, wo,
                     relu=True, out_dtype=jnp.bfloat16)    # (n, ho, wo, coutp)

    # shortcut: identity, or 1x1 strided conv + bn (fused kernel)
    if stride != 1 or cin != cout:
        ss, bs = _fold_bn(*params["bn_sc"])
        res = _shortcut_proj(x, params["w_sc"], ss, bs, stride, ho, wo, coutp)
    else:
        res = jnp.pad(x, ((0, 0), (0, 0), (0, 0), (0, coutp - cin))).astype(jnp.bfloat16)

    # conv2 (3x3, stride=1, pad=1) + bn2 + residual add + relu — fused, f32 output
    w2p = jnp.pad(params["w2"], ((0, 0), (0, coutp - cout), (0, 0), (0, 0)))
    xin2, w2, taps2 = _phase_conv3x3_inputs(out1, w2p, s2, 1, ho, wo, coutp)
    out2 = _tap_conv(xin2, w2, _pad_shift(b2, coutp), taps2, ho, wo,
                     relu=True, residual=res, out_dtype=jnp.float32)

    return jnp.transpose(out2[..., :cout], (0, 3, 1, 2))   # NHWC -> NCHW


# --------------------- deterministic parameter construction ------------------

def init_params(key, cin, cout, stride):
    keys = jax.random.split(key, 6)

    def bn(k):
        k1, k2, k3, k4 = jax.random.split(k, 4)
        gamma = 1.0 + 0.1 * jax.random.normal(k1, (cout,), jnp.float32)
        beta = 0.1 * jax.random.normal(k2, (cout,), jnp.float32)
        mean = 0.1 * jax.random.normal(k3, (cout,), jnp.float32)
        var = 1.0 + 0.2 * jax.random.uniform(k4, (cout,), jnp.float32)
        return (gamma, beta, mean, var)

    p = {
        "w1": 0.1 * jax.random.normal(keys[0], (cout, cin, 3, 3), jnp.float32),
        "bn1": bn(keys[1]),
        "w2": 0.1 * jax.random.normal(keys[2], (cout, cout, 3, 3), jnp.float32),
        "bn2": bn(keys[3]),
    }
    if stride != 1 or cin != cout:
        p["w_sc"] = 0.1 * jax.random.normal(keys[4], (cout, cin, 1, 1), jnp.float32)
        p["bn_sc"] = bn(keys[5])
    return p


# ---------------------------- pure-JAX reference ------------------------------

def _conv_ref(x, w, stride, pad):
    return jax.lax.conv_general_dilated(
        x, w, (stride, stride), [(pad, pad), (pad, pad)],
        dimension_numbers=("NCHW", "OIHW", "NCHW"))


def _bn_ref(x, bn, eps=1e-5):
    gamma, beta, mean, var = (a.reshape(1, -1, 1, 1) for a in bn)
    return (x - mean) / jnp.sqrt(var + eps) * gamma + beta


def basic_block_ref(x, params, stride):
    cin, cout = x.shape[1], params["w1"].shape[0]
    out = jax.nn.relu(_bn_ref(_conv_ref(x, params["w1"], stride, 1), params["bn1"]))
    out = _bn_ref(_conv_ref(out, params["w2"], 1, 1), params["bn2"])
    if stride != 1 or cin != cout:
        sc = _bn_ref(_conv_ref(x, params["w_sc"], stride, 0), params["bn_sc"])
    else:
        sc = x
    return jax.nn.relu(out + sc)


if __name__ == "__main__":
    key = jax.random.PRNGKey(0)
    kx1, kx2, kp1, kp2 = jax.random.split(key, 4)

    # bf16 MXU inputs (f32 accumulation) -> slightly looser tolerance vs f32 reference.
    RTOL, ATOL = 2e-2, 3e-2

    # Case 1: projection shortcut (stride=2, 4 -> 8 channels), x: (2, 4, 16, 16)
    x1 = jax.random.normal(kx1, (2, 4, 16, 16), jnp.float32)
    p1 = init_params(kp1, 4, 8, 2)
    y1 = jax.block_until_ready(basic_block_forward(x1, p1, 2))
    r1 = basic_block_ref(x1, p1, 2)
    np.testing.assert_allclose(np.asarray(y1), np.asarray(r1), rtol=RTOL, atol=ATOL)

    # Case 2: identity shortcut (stride=1, 8 -> 8 channels), x: (2, 8, 16, 16)
    x2 = jax.random.normal(kx2, (2, 8, 16, 16), jnp.float32)
    p2 = init_params(kp2, 8, 8, 1)
    y2 = jax.block_until_ready(basic_block_forward(x2, p2, 1))
    r2 = basic_block_ref(x2, p2, 1)
    np.testing.assert_allclose(np.asarray(y2), np.asarray(r2), rtol=RTOL, atol=ATOL)

    print("KERNEL_OK")
</pallas_src>

<mosaic_0001>
module attributes {stable_mosaic.version = 11 : i64} {
  func.func @_tap_conv_kernel(%arg0: i32, %arg1: i32, %arg2: memref<1x9x9x16xbf16, #tpu.memory_space<vmem>>, %arg3: memref<4x16x128xbf16, #tpu.memory_space<vmem>>, %arg4: memref<1x128xf32, #tpu.memory_space<vmem>>, %arg5: memref<1x8x8x128xbf16, #tpu.memory_space<vmem>>) attributes {dimension_semantics = [#tpu.dimension_semantics<parallel>, #tpu.dimension_semantics<parallel>], iteration_bounds = array<i64: 2, 1>, scalar_prefetch = 0 : i64, scratch_operands = 0 : i64, tpu.core_type = #tpu.core_type<tc>, window_params = [{transform_indices = @transform_0, window_bounds = array<i64: 1, 9, 9, 16>}, {pipeline_mode = #tpu.pipeline_mode<synchronous>, transform_indices = @transform_1, window_bounds = array<i64: 4, 16, 128>}, {pipeline_mode = #tpu.pipeline_mode<synchronous>, transform_indices = @transform_2, window_bounds = array<i64: 1, 128>}, {transform_indices = @transform_3, window_bounds = array<i64: 1, 8, 8, 128>}]} {
    %c8_i32 = arith.constant 8 : i32
    %0 = arith.muli %arg1, %c8_i32 : i32
    %cst = arith.constant 0.000000e+00 : f32
    %1 = vector.broadcast %cst : f32 to vector<64x128xf32>
    %c0_i32 = arith.constant 0 : i32
    %2 = arith.addi %0, %c0_i32 : i32
    %c0 = arith.constant 0 : index
    %3 = arith.index_cast %2 : i32 to index
    %c0_0 = arith.constant 0 : index
    %c0_1 = arith.constant 0 : index
    %4 = vector.load %arg2[%c0, %3, %c0_0, %c0_1] : memref<1x9x9x16xbf16, #tpu.memory_space<vmem>>, vector<1x8x8x16xbf16>
    %5 = vector.shape_cast %4 : vector<1x8x8x16xbf16> to vector<64x16xbf16>
    %c0_2 = arith.constant 0 : index
    %c0_3 = arith.constant 0 : index
    %c0_4 = arith.constant 0 : index
    %6 = vector.load %arg3[%c0_2, %c0_3, %c0_4] : memref<4x16x128xbf16, #tpu.memory_space<vmem>>, vector<1x16x128xbf16>
    %7 = vector.shape_cast %6 : vector<1x16x128xbf16> to vector<16x128xbf16>
    %cst_5 = arith.constant dense<0.000000e+00> : vector<64x128xf32>
    %8 = tpu.matmul %5, %7, %cst_5 {dimension_numbers = #tpu.dot_dimension_numbers<[1], [0], [0], [1], [0, 0, 1, 1], [], []>} : vector<64x16xbf16>, vector<16x128xbf16>, vector<64x128xf32> -> vector<64x128xf32>
    %9 = arith.addf %1, %8 : vector<64x128xf32>
    %c0_i32_6 = arith.constant 0 : i32
    %10 = arith.addi %0, %c0_i32_6 : i32
    %c0_7 = arith.constant 0 : index
    %11 = arith.index_cast %10 : i32 to index
    %c1 = arith.constant 1 : index
    %c0_8 = arith.constant 0 : index
    %12 = vector.load %arg2[%c0_7, %11, %c1, %c0_8] : memref<1x9x9x16xbf16, #tpu.memory_space<vmem>>, vector<1x8x8x16xbf16>
    %13 = vector.shape_cast %12 : vector<1x8x8x16xbf16> to vector<64x16xbf16>
    %c1_9 = arith.constant 1 : index
    %c0_10 = arith.constant 0 : index
    %c0_11 = arith.constant 0 : index
    %14 = vector.load %arg3[%c1_9, %c0_10, %c0_11] : memref<4x16x128xbf16, #tpu.memory_space<vmem>>, vector<1x16x128xbf16>
    %15 = vector.shape_cast %14 : vector<1x16x128xbf16> to vector<16x128xbf16>
    %cst_12 = arith.constant dense<0.000000e+00> : vector<64x128xf32>
    %16 = tpu.matmul %13, %15, %cst_12 {dimension_numbers = #tpu.dot_dimension_numbers<[1], [0], [0], [1], [0, 0, 1, 1], [], []>} : vector<64x16xbf16>, vector<16x128xbf16>, vector<64x128xf32> -> vector<64x128xf32>
    %17 = arith.addf %9, %16 : vector<64x128xf32>
    %c1_i32 = arith.constant 1 : i32
    %18 = arith.addi %0, %c1_i32 : i32
    %c0_13 = arith.constant 0 : index
    %19 = arith.index_cast %18 : i32 to index
    %c0_14 = arith.constant 0 : index
    %c0_15 = arith.constant 0 : index
    %20 = vector.load %arg2[%c0_13, %19, %c0_14, %c0_15] : memref<1x9x9x16xbf16, #tpu.memory_space<vmem>>, vector<1x8x8x16xbf16>
    %21 = vector.shape_cast %20 : vector<1x8x8x16xbf16> to vector<64x16xbf16>
    %c2 = arith.constant 2 : index
    %c0_16 = arith.constant 0 : index
    %c0_17 = arith.constant 0 : index
    %22 = vector.load %arg3[%c2, %c0_16, %c0_17] : memref<4x16x128xbf16, #tpu.memory_space<vmem>>, vector<1x16x128xbf16>
    %23 = vector.shape_cast %22 : vector<1x16x128xbf16> to vector<16x128xbf16>
    %cst_18 = arith.constant dense<0.000000e+00> : vector<64x128xf32>
    %24 = tpu.matmul %21, %23, %cst_18 {dimension_numbers = #tpu.dot_dimension_numbers<[1], [0], [0], [1], [0, 0, 1, 1], [], []>} : vector<64x16xbf16>, vector<16x128xbf16>, vector<64x128xf32> -> vector<64x128xf32>
    %25 = arith.addf %17, %24 : vector<64x128xf32>
    %c1_i32_19 = arith.constant 1 : i32
    %26 = arith.addi %0, %c1_i32_19 : i32
    %c0_20 = arith.constant 0 : index
    %27 = arith.index_cast %26 : i32 to index
    %c1_21 = arith.constant 1 : index
    %c0_22 = arith.constant 0 : index
    %28 = vector.load %arg2[%c0_20, %27, %c1_21, %c0_22] : memref<1x9x9x16xbf16, #tpu.memory_space<vmem>>, vector<1x8x8x16xbf16>
    %29 = vector.shape_cast %28 : vector<1x8x8x16xbf16> to vector<64x16xbf16>
    %c3 = arith.constant 3 : index
    %c0_23 = arith.constant 0 : index
    %c0_24 = arith.constant 0 : index
    %30 = vector.load %arg3[%c3, %c0_23, %c0_24] : memref<4x16x128xbf16, #tpu.memory_space<vmem>>, vector<1x16x128xbf16>
    %31 = vector.shape_cast %30 : vector<1x16x128xbf16> to vector<16x128xbf16>
    %cst_25 = arith.constant dense<0.000000e+00> : vector<64x128xf32>
    %32 = tpu.matmul %29, %31, %cst_25 {dimension_numbers = #tpu.dot_dimension_numbers<[1], [0], [0], [1], [0, 0, 1, 1], [], []>} : vector<64x16xbf16>, vector<16x128xbf16>, vector<64x128xf32> -> vector<64x128xf32>
    %33 = arith.addf %25, %32 : vector<64x128xf32>
    %c0_26 = arith.constant 0 : index
    %c0_27 = arith.constant 0 : index
    %34 = vector.load %arg4[%c0_26, %c0_27] : memref<1x128xf32, #tpu.memory_space<vmem>>, vector<1x128xf32>
    %35 = vector.broadcast %34 : vector<1x128xf32> to vector<64x128xf32>
    %36 = arith.addf %33, %35 : vector<64x128xf32>
    %cst_28 = arith.constant 0.000000e+00 : f32
    %37 = vector.broadcast %cst_28 : f32 to vector<64x128xf32>
    %38 = arith.maximumf %36, %37 : vector<64x128xf32>
    %39 = vector.shape_cast %38 : vector<64x128xf32> to vector<1x8x8x128xf32>
    %40 = arith.truncf %39 : vector<1x8x8x128xf32> to vector<1x8x8x128xbf16>
    %c0_29 = arith.constant 0 : index
    %c0_30 = arith.constant 0 : index
    %c0_31 = arith.constant 0 : index
    %c0_32 = arith.constant 0 : index
    %41 = vector.load %arg5[%c0_29, %c0_30, %c0_31, %c0_32] : memref<1x8x8x128xbf16, #tpu.memory_space<vmem>>, vector<1x8x8x128xbf16>
    tpu.vector_store %arg5[%c0_29, %c0_30, %c0_31, %c0_32], %40 {strides = array<i32>} : memref<1x8x8x128xbf16, #tpu.memory_space<vmem>>, vector<1x8x8x128xbf16>,
    return
  }
  func.func @transform_0(%arg0: i32, %arg1: i32) -> (i32, i32, i32, i32) {
    %c0_i32 = arith.constant 0 : i32
    %c0_i32_0 = arith.constant 0 : i32
    %c0_i32_1 = arith.constant 0 : i32
    %c0_i32_2 = arith.constant 0 : i32
    return %arg0, %c0_i32, %c0_i32_0, %c0_i32_1 : i32, i32, i32, i32
  }
  func.func @transform_1(%arg0: i32, %arg1: i32) -> (i32, i32, i32) {
    %c0_i32 = arith.constant 0 : i32
    %c0_i32_0 = arith.constant 0 : i32
    %c0_i32_1 = arith.constant 0 : i32
    %c0_i32_2 = arith.constant 0 : i32
    return %c0_i32, %c0_i32_0, %c0_i32_1 : i32, i32, i32
  }
  func.func @transform_2(%arg0: i32, %arg1: i32) -> (i32, i32) {
    %c0_i32 = arith.constant 0 : i32
    %c0_i32_0 = arith.constant 0 : i32
    %c0_i32_1 = arith.constant 0 : i32
    return %c0_i32, %c0_i32_0 : i32, i32
  }
  func.func @transform_3(%arg0: i32, %arg1: i32) -> (i32, i32, i32, i32) {
    %c0_i32 = arith.constant 0 : i32
    %c0_i32_0 = arith.constant 0 : i32
    %c0_i32_1 = arith.constant 0 : i32
    return %arg0, %arg1, %c0_i32, %c0_i32_0 : i32, i32, i32, i32
  }
}

module attributes {stable_mosaic.version = 11 : i64} {
  func.func @_tap_conv_kernel(%arg0: i32, %arg1: i32, %arg2: memref<1x9x9x16xbf16, #tpu.memory_space<vmem>>, %arg3: memref<4x16x128xbf16, #tpu.memory_space<vmem>>, %arg4: memref<1x128xf32, #tpu.memory_space<vmem>>, %arg5: memref<1x8x8x128xbf16, #tpu.memory_space<vmem>>) attributes {dimension_semantics = [#tpu.dimension_semantics<parallel>, #tpu.dimension_semantics<parallel>], iteration_bounds = array<i64: 2, 1>, scalar_prefetch = 0 : i64, scratch_operands = 0 : i64, tpu.core_type = #tpu.core_type<tc>, window_params = [{transform_indices = @transform_0, window_bounds = array<i64: 1, 9, 9, 16>}, {pipeline_mode = #tpu.pipeline_mode<synchronous>, transform_indices = @transform_1, window_bounds = array<i64: 4, 16, 128>}, {pipeline_mode = #tpu.pipeline_mode<synchronous>, transform_indices = @transform_2, window_bounds = array<i64: 1, 128>}, {transform_indices = @transform_3, window_bounds = array<i64: 1, 8, 8, 128>}]} {
    %c8_i32 = arith.constant 8 : i32
    %0 = arith.muli %arg1, %c8_i32 : i32
    %cst = arith.constant 0.000000e+00 : f32
    %1 = vector.broadcast %cst : f32 to vector<64x128xf32>
    %c0_i32 = arith.constant 0 : i32
    %2 = arith.addi %0, %c0_i32 : i32
    %c0 = arith.constant 0 : index
    %3 = arith.index_cast %2 : i32 to index
    %c0_0 = arith.constant 0 : index
    %c0_1 = arith.constant 0 : index
    %4 = vector.load %arg2[%c0, %3, %c0_0, %c0_1] : memref<1x9x9x16xbf16, #tpu.memory_space<vmem>>, vector<1x8x8x16xbf16>
    %5 = vector.shape_cast %4 : vector<1x8x8x16xbf16> to vector<64x16xbf16>
    %c0_2 = arith.constant 0 : index
    %c0_3 = arith.constant 0 : index
    %c0_4 = arith.constant 0 : index
    %6 = vector.load %arg3[%c0_2, %c0_3, %c0_4] : memref<4x16x128xbf16, #tpu.memory_space<vmem>>, vector<1x16x128xbf16>
    %7 = vector.shape_cast %6 : vector<1x16x128xbf16> to vector<16x128xbf16>
    %cst_5 = arith.constant dense<0.000000e+00> : vector<64x128xf32>
    %8 = tpu.matmul %5, %7, %cst_5 {dimension_numbers = #tpu.dot_dimension_numbers<[1], [0], [0], [1], [0, 0, 1, 1], [], []>} : vector<64x16xbf16>, vector<16x128xbf16>, vector<64x128xf32> -> vector<64x128xf32>
    %9 = arith.addf %1, %8 : vector<64x128xf32>
    %c0_i32_6 = arith.constant 0 : i32
    %10 = arith.addi %0, %c0_i32_6 : i32
    %c0_7 = arith.constant 0 : index
    %11 = arith.index_cast %10 : i32 to index
    %c1 = arith.constant 1 : index
    %c0_8 = arith.constant 0 : index
    %12 = vector.load %arg2[%c0_7, %11, %c1, %c0_8] : memref<1x9x9x16xbf16, #tpu.memory_space<vmem>>, vector<1x8x8x16xbf16>
    %13 = vector.shape_cast %12 : vector<1x8x8x16xbf16> to vector<64x16xbf16>
    %c1_9 = arith.constant 1 : index
    %c0_10 = arith.constant 0 : index
    %c0_11 = arith.constant 0 : index
    %14 = vector.load %arg3[%c1_9, %c0_10, %c0_11] : memref<4x16x128xbf16, #tpu.memory_space<vmem>>, vector<1x16x128xbf16>
    %15 = vector.shape_cast %14 : vector<1x16x128xbf16> to vector<16x128xbf16>
    %cst_12 = arith.constant dense<0.000000e+00> : vector<64x128xf32>
    %16 = tpu.matmul %13, %15, %cst_12 {dimension_numbers = #tpu.dot_dimension_numbers<[1], [0], [0], [1], [0, 0, 1, 1], [], []>} : vector<64x16xbf16>, vector<16x128xbf16>, vector<64x128xf32> -> vector<64x128xf32>
    %17 = arith.addf %9, %16 : vector<64x128xf32>
    %c1_i32 = arith.constant 1 : i32
    %18 = arith.addi %0, %c1_i32 : i32
    %c0_13 = arith.constant 0 : index
    %19 = arith.index_cast %18 : i32 to index
    %c0_14 = arith.constant 0 : index
    %c0_15 = arith.constant 0 : index
    %20 = vector.load %arg2[%c0_13, %19, %c0_14, %c0_15] : memref<1x9x9x16xbf16, #tpu.memory_space<vmem>>, vector<1x8x8x16xbf16>
    %21 = vector.shape_cast %20 : vector<1x8x8x16xbf16> to vector<64x16xbf16>
    %c2 = arith.constant 2 : index
    %c0_16 = arith.constant 0 : index
    %c0_17 = arith.constant 0 : index
    %22 = vector.load %arg3[%c2, %c0_16, %c0_17] : memref<4x16x128xbf16, #tpu.memory_space<vmem>>, vector<1x16x128xbf16>
    %23 = vector.shape_cast %22 : vector<1x16x128xbf16> to vector<16x128xbf16>
    %cst_18 = arith.constant dense<0.000000e+00> : vector<64x128xf32>
    %24 = tpu.matmul %21, %23, %cst_18 {dimension_numbers = #tpu.dot_dimension_numbers<[1], [0], [0], [1], [0, 0, 1, 1], [], []>} : vector<64x16xbf16>, vector<16x128xbf16>, vector<64x128xf32> -> vector<64x128xf32>
    %25 = arith.addf %17, %24 : vector<64x128xf32>
    %c1_i32_19 = arith.constant 1 : i32
    %26 = arith.addi %0, %c1_i32_19 : i32
    %c0_20 = arith.constant 0 : index
    %27 = arith.index_cast %26 : i32 to index
    %c1_21 = arith.constant 1 : index
    %c0_22 = arith.constant 0 : index
    %28 = vector.load %arg2[%c0_20, %27, %c1_21, %c0_22] : memref<1x9x9x16xbf16, #tpu.memory_space<vmem>>, vector<1x8x8x16xbf16>
    %29 = vector.shape_cast %28 : vector<1x8x8x16xbf16> to vector<64x16xbf16>
    %c3 = arith.constant 3 : index
    %c0_23 = arith.constant 0 : index
    %c0_24 = arith.constant 0 : index
    %30 = vector.load %arg3[%c3, %c0_23, %c0_24] : memref<4x16x128xbf16, #tpu.memory_space<vmem>>, vector<1x16x128xbf16>
    %31 = vector.shape_cast %30 : vector<1x16x128xbf16> to vector<16x128xbf16>
    %cst_25 = arith.constant dense<0.000000e+00> : vector<64x128xf32>
    %32 = tpu.matmul %29, %31, %cst_25 {dimension_numbers = #tpu.dot_dimension_numbers<[1], [0], [0], [1], [0, 0, 1, 1], [], []>} : vector<64x16xbf16>, vector<16x128xbf16>, vector<64x128xf32> -> vector<64x128xf32>
    %33 = arith.addf %25, %32 : vector<64x128xf32>
    %c0_26 = arith.constant 0 : index
    %c0_27 = arith.constant 0 : index
    %34 = vector.load %arg4[%c0_26, %c0_27] : memref<1x128xf32, #tpu.memory_space<vmem>>, vector<1x128xf32>
    %35 = vector.broadcast %34 : vector<1x128xf32> to vector<64x128xf32>
    %36 = arith.addf %33, %35 : vector<64x128xf32>
    %cst_28 = arith.constant 0.000000e+00 : f32
    %37 = vector.broadcast %cst_28 : f32 to vector<64x128xf32>
    %38 = arith.maximumf %36, %37 : vector<64x128xf32>
    %39 = vector.shape_cast %38 : vector<64x128xf32> to vector<1x8x8x128xf32>
    %40 = arith.truncf %39 : vector<1x8x8x128xf32> to vector<1x8x8x128xbf16>
    %c0_29 = arith.constant 0 : index
    %c0_30 = arith.constant 0 : index
    %c0_31 = arith.constant 0 : index
    %c0_32 = arith.constant 0 : index
    %41 = vector.load %arg5[%c0_29, %c0_30, %c0_31, %c0_32] : memref<1x8x8x128xbf16, #tpu.memory_space<vmem>>, vector<1x8x8x128xbf16>
    tpu.vector_store %arg5[%c0_29, %c0_30, %c0_31, %c0_32], %40 {strides = array<i32>} : memref<1x8x8x128xbf16, #tpu.memory_space<vmem>>, vector<1x8x8x128xbf16>,
    return
  }
  func.func @transform_0(%arg0: i32, %arg1: i32) -> (i32, i32, i32, i32) {
    %c0_i32 = arith.constant 0 : i32
    %c0_i32_0 = arith.constant 0 : i32
    %c0_i32_1 = arith.constant 0 : i32
    %c0_i32_2 = arith.constant 0 : i32
    return %arg0, %c0_i32, %c0_i32_0, %c0_i32_1 : i32, i32, i32, i32
  }
  func.func @transform_1(%arg0: i32, %arg1: i32) -> (i32, i32, i32) {
    %c0_i32 = arith.constant 0 : i32
    %c0_i32_0 = arith.constant 0 : i32
    %c0_i32_1 = arith.constant 0 : i32
    %c0_i32_2 = arith.constant 0 : i32
    return %c0_i32, %c0_i32_0, %c0_i32_1 : i32, i32, i32
  }
  func.func @transform_2(%arg0: i32, %arg1: i32) -> (i32, i32) {
    %c0_i32 = arith.constant 0 : i32
    %c0_i32_0 = arith.constant 0 : i32
    %c0_i32_1 = arith.constant 0 : i32
    return %c0_i32, %c0_i32_0 : i32, i32
  }
  func.func @transform_3(%arg0: i32, %arg1: i32) -> (i32, i32, i32, i32) {
    %c0_i32 = arith.constant 0 : i32
    %c0_i32_0 = arith.constant 0 : i32
    %c0_i32_1 = arith.constant 0 : i32
    return %arg0, %arg1, %c0_i32, %c0_i32_0 : i32, i32, i32, i32
  }
}

</mosaic_0001>

<bundles_post_ra>
// kernel: tpu_custom_call.1
= control target key start
LH: loop header
LB: loop body
LE: loop exit
PB: predicated region body
PF: predicated region fallthrough
CT: control target
= control target key end

     0   :  { %8 = vsyncpa [#allocation3], 0  ;;  %s1648_s0 = inlined_call_operand.vmem [shape: bf16[2,9,9,16], index: 0, kind: input, shape index: {}]   ;;  %s1649_s1 = inlined_call_operand.vmem [shape: bf16[4,16,128], index: 1, kind: input, shape index: {}]   ;;  %s1650_s2 = inlined_call_operand.vmem [shape: f32[1,128], index: 2, kind: input, shape index: {}]   ;;  %s1651_s3 = inlined_call_operand.hbm [shape: bf16[2,8,8,128], index: 3, kind: output, shape index: {}]  }
   0x1   :  { %10 = vsyncpa [#allocation3 + $0x1], 0  ;;  %s1378_s12 = smov 0   ;;  %s1380_s13 = smov 0  }
   0x2   :  { %s1382_s14 = smov 0   ;;  %s1384_s15 = smov 0  }
   0x3   :  { %s1386_s16 = smov 0   ;;  %s1388_s17 = smov 0  }
   0x4 LB: > { %s1018_s18 = sadd.s32 4294967295, %s1353_s17   ;;  %s1019_s19 = sadd.s32 4294967294, %s1353_s17   ;;  %s1353_s17 = sphi %s1388_s17, %s16_s17   ;;  %s1349_s16 = sphi %s1386_s16, %s1660_s16   ;;  %s1345_s15 = sphi %s1384_s15, %s1659_s15   ;;  %s1341_s14 = sphi %s1382_s14, %s1658_s14   ;;  %s1337_s13 = sphi %s1380_s13, %s1657_s13   ;;  %s1333_s12 = sphi %s1378_s12, %s1656_s12  }
   0x5   : > { %s28_s20 = sadd.s32 1, %s1349_s16  ;;  %s105_s21 = sadd.s32 1, %s1341_s14 }
   0x6   : > { %p30_p0 = scmp.ge.s32.totalorder %s28_s20, 2  ;;  %p115_p1 = scmp.ne.s32.totalorder %s1341_s14, %s1337_s13 }
   0x7   : > { %p116_p2 = scmp.eq.s32.totalorder %s1018_s18, 1  ;;  %p121_p3 = scmp.ne.s32.totalorder %s1337_s13, %s1333_s12 }
   0x8   : > { %s1662_s20 = smov (%p30_p0, %s28_s20), 0  ;;  %p122_p5 = scmp.eq.s32.totalorder %s1019_s19, 1 }
   0x9   : > { %p1418_p4 = por %p116_p2, %p115_p1  ;;  %s100_s23 = ssub.s32 %s1349_s16, %s1662_s20 }
   0xa   : > { %p1022_p6 = scmp.ge.s32.totalorder %s1353_s17, 1  ;;  %p103_p7 = scmp.eq.s32.totalorder %s100_s23, 0 }
   0xb   : > { %p1425_p8 = por %p122_p5, %p121_p3  ;;  %p154_p9 = scmp.lt.s32.totalorder %s1353_s17, 3 }
   0xc   : > { %s1431_s25 = scalar_select %p103_p7, %s1341_s14, %s105_s21  }
   0xd   : > { %p155_p10 = pnand %p1022_p6, %p154_p9 }
   0xe   : > { %v1263_v0 = vld [vmem:[%s1649_s1 + $0x10] sm:$0xff] (!%p155_p10)   ;;  %p178_p11 = scmp.lt.s32.totalorder (!%p155_p10), %s1345_s15, 1  ;;  %v1266_v1 = vld [vmem:[%s1649_s1 + $0x8] sm:$0xff] (!%p155_p10)   ;;  %v1444_v2 = vld [vmem:[%s1649_s1] sm:$0xff] (!%p155_p10)   ;;  %vm343_vm0 = vcmask (!%p155_p10), 130048   ;;  %s175_s21 = sand.u32 (!%p155_p10), 1, %s1337_s13  }
   0xf   : > { %158 = sbr.rel (%p155_p10) target bundleno = 320 (0x140), region = 32  ;;  %1161 = vmatprep.subr.bf16.mxu0 (!%p155_p10), %v1263_v0  ;;  %1141 = vmatprep.subr.bf16.mxu1 (!%p155_p10), %v1266_v1  ;;  %v1270_v3 = vld [vmem:[%s1649_s1 + $0x18] sm:$0xff] (!%p155_p10)   ;;  %vm207_vm1 = vsmask.f32 (!%p155_p10), 3328  ;;  %vm208_vm2 = vsmask.f32 (!%p155_p10), 7440 }
  0x10   : > { %1162 = vmatpush3.bf16.msra.mxu0 (!%p155_p10), %v1263_v0  ;;  %1142 = vmatpush3.bf16.msra.mxu1 (!%p155_p10), %v1266_v1  ;;  %vm1486_vm3 = vmor (!%p155_p10), %vm207_vm1, %vm208_vm2  ;;  %v1091_v31 = vld [vmem:[%s1650_s2] ss:$0 sm:$0xff] (!%p155_p10)  ;;  %s1023_s23 = sshll.u32 (!%p155_p10), %s175_s21, 5  ;;  %s1097_s28 = sshll.u32 (!%p155_p10), %s1345_s15, 9 }
  0x11   : > { %1151 = vmatprep.subr.bf16.mxu1 (!%p155_p10), %v1444_v2  ;;  %1171 = vmatprep.subr.bf16.mxu0 (!%p155_p10), %v1270_v3  ;;  %s177_s26 = scalar_lea.vmem (!%p155_p10), [#allocation2], %s1023_s23  ;;  %s1596_s4 = scalar_lea.hbm (!%p155_p10), %s1651_s3, %s1097_s28 }
  0x12   : > { %s939_s27 = sshll.u32 (!%p155_p10), %s177_s26, 4  ;;  %s1598_s27 = int_to_ptr.vmem [resolvable:$true] %s939_s27 }
  0x13   : > { %s1275_s5 = scalar_lea.vmem (!%p155_p10), %s1598_s27, 512 }
  0x14   : > { %p1276_p12 = scmp.ne.s32.totalorder (!%p155_p10), %s1598_s27, %s1275_s5 }
  0x16   : > { %s179_s30 = scalar_select %p178_p11, %s1345_s15, 1 }
  0x17   : > { %s1602_s15 = scalar_lea.sflag [#allocation3], %s175_s21  ;;  %p1277_p13 = pnand %p1276_p12, %p1418_p4 }
  0x18   : > { %s1205_s6 = smul.u32 72, %s179_s30 }
  0x19   : > { %p1278_p0 = pneg %p1277_p13 }
  0x1a   : > { %s1453_s11 = scalar_lea.vmem %s1648_s0, %s1205_s6  ;;  %s1355_s6 = smov [#allocation2]  }
  0x1b   : > { %v1264_v4 = vld [vmem:[%s1453_s11 + $0x8] ss:$8 sps:$4 sm:$0xff]   ;;  %v1265_v5 = vld [vmem:[%s1453_s11 + $0x18] ss:$8 sps:$4 sm:$0xff]   ;;  %v199_v9 = vld [vmem:[%s1453_s11 + $0x4] sm:$0x1] }
  0x1c   : > { %1163 = vmatprep.mubr.msk.bf16.mxu0 %vm343_vm0, %v1264_v4  ;;  %v1267_v6 = vld [vmem:[%s1453_s11 + $0x28] ss:$8 sps:$4 sm:$0xff]   ;;  %v1461_v7 = vld [vmem:[%s1453_s11] sm:$0xf]  ;;  %v200_v10 = vld [vmem:[%s1453_s11 + $0xc] sm:$0x1] }
  0x1d   : > { %1164 = vmatmul.mubr.msk.bf16.vlgmr.msra.gmra.mrb[0].mxu0 %vm343_vm0, %v1265_v5  ;;  %v1464_v8 = vld [vmem:[%s1453_s11 + $0x8] sm:$0xf]  ;;  %v211_v11 = vshrl.u32 %v1461_v7, 16  ;;  %v214_v12 = vshll.u32 %v1461_v7, 16  ;;  %v220_v13 = vshll.u32 %v199_v9, 16  ;;  %v234_v16 = vshll.u32 %v200_v10, 16 }
  0x1e   : > { %1167 = vmatprep.mubr.msk.bf16.mxu0 %vm343_vm0, %v1267_v6  ;;  %v225_v14 = vshrl.u32 %v1464_v8, 16  ;;  %1172 = vmatpush3.bf16.msra.mxu0 %v1270_v3  ;;  %v228_v15 = vshll.u32 %v1464_v8, 16  ;;  %v1269_v21 = vld [vmem:[%s1453_s11 + $0x38] ss:$8 sps:$4 sm:$0xff]   ;;  %v1475_v24 = vld [vmem:[%s1453_s11 + $0x10] sm:$0xf] }
  0x1f   : > { %v213_v17 = vrot.slane %v211_v11, 4  ;;  %v216_v18 = vrot.slane %v214_v12, 5  ;;  %v222_v19 = vrot.slane %v220_v13, 5  ;;  %v236_v23 = vrot.slane %v234_v16, 5  ;;  %v1478_v25 = vld [vmem:[%s1453_s11 + $0x18] sm:$0xf] }
  0x20   : > { %v227_v20 = vrot.slane %v225_v14, 4  ;;  %v230_v22 = vrot.slane %v228_v15, 5  ;;  %v201_v27 = vld [vmem:[%s1453_s11 + $0x14] sm:$0x1]  ;;  %v202_v28 = vld [vmem:[%s1453_s11 + $0x1c] sm:$0x1] }
  0x21   : > { %v217_v26 = vor.u32 %v216_v18, %v213_v17  ;;  %v239_v29 = vshrl.u32 %v1475_v24, 16  ;;  %v242_v30 = vshll.u32 %v1475_v24, 16  ;;  %v248_v33 = vshll.u32 %v201_v27, 16  ;;  %v1064_v36 = vld [vmem:[%s1453_s11 + $0x8] sm:$0xf]  ;;  %s1279_s7 = sshll.u32 %s1355_s6, 4  ;;  %s1280_s7 = int_to_ptr.vmem [resolvable:$false] %s1279_s7 }
  0x22   : > { %v231_v32 = vor.u32 %v230_v22, %v227_v20  ;;  %v253_v34 = vshrl.u32 %v1478_v25, 16  ;;  %v256_v35 = vshll.u32 %v1478_v25, 16  ;;  %v262_v40 = vshll.u32 %v202_v28, 16  ;;  %v1065_v41 = vld [vmem:[%s1453_s11 + $0xc] sm:$0x1]  ;;  %s1281_s8 = scalar_lea.vmem %s1280_s7, 1024  ;;  %p1282_p1 = scmp.lt.s32.totalorder %s1598_s27, %s1280_s7 }
  0x23   : > { %v218_v37 = vrot.slane %v217_v26, 4  ;;  %v241_v38 = vrot.slane %v239_v29, 4  ;;  %v244_v39 = vrot.slane %v242_v30, 5  ;;  %v250_v43 = vrot.slane %v248_v33, 5  ;;  %v1066_v46 = vld [vmem:[%s1453_s11 + $0x10] sm:$0xf]  ;;  %p1283_p2 = scmp.lt.s32.totalorder %s1281_s8, %s1275_s5 }
  0x24   : > { %v232_v42 = vrot.slane %v231_v32, 4  ;;  %v255_v44 = vrot.slane %v253_v34, 4  ;;  %v258_v45 = vrot.slane %v256_v35, 5  ;;  %v264_v49 = vrot.slane %v262_v40, 5  ;;  %v1067_v53 = vld [vmem:[%s1453_s11 + $0x14] sm:$0x1] }
  0x25   : > { %1168 = vmatmul.mubr.msk.bf16.gmra.mrb[4].mxu0 %vm343_vm0, %v1269_v21  ;;  %v223_v47 = vsel %vm1486_vm3, %v218_v37, %v222_v19  ;;  %v245_v48 = vor.u32 %v244_v39, %v241_v38  ;;  %v667_v50 = vshrl.u32 %v1064_v36, 16  ;;  %v670_v54 = vshll.u32 %v1064_v36, 16  ;;  %v1502_v56 = vld [vmem:[%s1453_s11 + $0x20] sm:$0xf]  ;;  %v203_v1 = vld [vmem:[%s1453_s11 + $0x24] sm:$0x1]  ;;  %p1284_p3 = por %p1283_p2, %p1282_p1 }
  0x26   : > { %v237_v51 = vsel %vm1486_vm3, %v232_v42, %v236_v23  ;;  %v259_v52 = vor.u32 %v258_v45, %v255_v44  ;;  %v676_v55 = vshll.u32 %v1065_v41, 16  ;;  %v681_v60 = vshrl.u32 %v1066_v46, 16  ;;  %v1509_v6 = vld [vmem:[%s1453_s11 + $0x28] sm:$0xf]  ;;  %v204_v13 = vld [vmem:[%s1453_s11 + $0x2c] sm:$0x1] }
  0x27   : > { %v1027_v57 = vcombine.low %v223_v47, %v237_v51  ;;  %v246_v58 = vrot.slane %v245_v48, 4  ;;  %v669_v59 = vrot.slane %v667_v50, 4  ;;  %v672_v62 = vrot.slane %v670_v54, 5  ;;  %v1068_v15 = vld [vmem:[%s1453_s11 + $0x18] sm:$0xf]  ;;  %p1285_p5 = pnand %p1284_p3, %p1278_p0 }
  0x28   : > { %v260_v61 = vrot.slane %v259_v52, 4  ;;  %v678_v63 = vrot.slane %v676_v55, 5  ;;  %v684_v0 = vshll.u32 %v1066_v46, 16  ;;  %v683_v4 = vrot.slane %v681_v60, 4  ;;  %v1069_v26 = vld [vmem:[%s1453_s11 + $0x1c] sm:$0x1] }
  0x29   : > { %1143 = vmatprep.mubr.msk.bf16.mxu1 %vm343_vm0, %v1027_v57  ;;  %v251_v3 = vsel %vm1486_vm3, %v246_v58, %v250_v43  ;;  %v690_v5 = vshll.u32 %v1067_v53, 16  ;;  %v267_v9 = vshrl.u32 %v1502_v56, 16  ;;  %v673_v11 = vor.u32 %v672_v62, %v669_v59  ;;  %v1070_v30 = vld [vmem:[%s1453_s11 + $0x20] sm:$0xf]  ;;  %v1071_v39 = vld [vmem:[%s1453_s11 + $0x24] sm:$0x1] }
  0x2a   : > { %v265_v10 = vsel %vm1486_vm3, %v260_v61, %v264_v49  ;;  %v686_v12 = vrot.slane %v684_v0, 5  ;;  %v270_v14 = vshll.u32 %v1502_v56, 16  ;;  %v276_v19 = vshll.u32 %v203_v1, 16  ;;  %v1532_v50 = vld [vmem:[%s1453_s11 + $0x38] sm:$0xf] }
  0x2b   : > { %v1028_v16 = vcombine.low %v251_v3, %v265_v10  ;;  %v692_v17 = vrot.slane %v690_v5, 5  ;;  %v269_v18 = vrot.slane %v267_v9, 4  ;;  %v674_v20 = vrot.slane %v673_v11, 4  ;;  %v205_v51 = vld [vmem:[%s1453_s11 + $0x34] sm:$0x1] }
  0x2c   : > { %v687_v21 = vor.u32 %v686_v12, %v683_v4  ;;  %v272_v22 = vrot.slane %v270_v14, 5  ;;  %v281_v23 = vshrl.u32 %v1509_v6, 16  ;;  %v278_v27 = vrot.slane %v276_v19, 5  ;;  %v206_v62 = vld [vmem:[%s1453_s11 + $0x3c] sm:$0x1] }
  0x2d   : > { %1144 = vmatmul.mubr.msk.bf16.vlgmr.msra.gmra.mrb[0].mxu1 %vm343_vm0, %v1028_v16  ;;  %v284_v28 = vshll.u32 %v1509_v6, 16  ;;  %v290_v29 = vshll.u32 %v204_v13, 16  ;;  %v695_v32 = vshrl.u32 %v1068_v15, 16  ;;  %v679_v33 = vsel %vm1486_vm3, %v674_v20, %v678_v63  ;;  %v1072_v10 = vld [vmem:[%s1453_s11 + $0x28] sm:$0xf] }
  0x2e   : > { %1152 = vmatpush3.bf16.msra.mxu1 %v1444_v2  ;;  %v688_v34 = vrot.slane %v687_v21, 4  ;;  %v273_v35 = vor.u32 %v272_v22, %v269_v18  ;;  %v283_v36 = vrot.slane %v281_v23, 4  ;;  %v698_v41 = vshll.u32 %v1068_v15, 16  ;;  %v1529_v2 = vld [vmem:[%s1453_s11 + $0x30] sm:$0xf] }
  0x2f   : > { %v286_v37 = vrot.slane %v284_v28, 5  ;;  %v292_v38 = vrot.slane %v290_v29, 5  ;;  %v697_v40 = vrot.slane %v695_v32, 4  ;;  %v704_v44 = vshll.u32 %v1069_v26, 16  ;;  %v1073_v11 = vld [vmem:[%s1453_s11 + $0x2c] sm:$0x1] }
  0x30   : > { %v693_v42 = vsel %vm1486_vm3, %v688_v34, %v692_v17  ;;  %v274_v43 = vrot.slane %v273_v35, 4  ;;  %v709_v45 = vshrl.u32 %v1070_v30, 16  ;;  %v700_v48 = vrot.slane %v698_v41, 5  ;;  %v1074_v15 = vld [vmem:[%s1453_s11 + $0x30] sm:$0xf] }
  0x31   : > { %v1082_v46 = vcombine.low %v679_v33, %v693_v42  ;;  %v287_v47 = vor.u32 %v286_v37, %v283_v36  ;;  %v712_v49 = vshll.u32 %v1070_v30, 16  ;;  %v706_v53 = vrot.slane %v704_v44, 5  ;;  %v1075_v22 = vld [vmem:[%s1453_s11 + $0x34] sm:$0x1]  ;;  %v1076_v30 = vld [vmem:[%s1453_s11 + $0x38] sm:$0xf] }
  0x32   : > { %v279_v52 = vsel %vm1486_vm3, %v274_v43, %v278_v27  ;;  %v711_v54 = vrot.slane %v709_v45, 4  ;;  %v718_v55 = vshll.u32 %v1071_v39, 16  ;;  %v701_v58 = vor.u32 %v700_v48, %v697_v40  ;;  %v1077_v36 = vld [vmem:[%s1453_s11 + $0x3c] sm:$0x1]  ;;  %v1078_v41 = vld [vmem:[%s1453_s11 + $0x40] sm:$0xf] }
  0x33   : > { %1173 = vmatprep.mubr.msk.bf16.mxu0 %vm343_vm0, %v1082_v46  ;;  %v288_v57 = vrot.slane %v287_v47, 4  ;;  %v714_v59 = vrot.slane %v712_v49, 5  ;;  %v295_v60 = vshrl.u32 %v1529_v2, 16  ;;  %v298_v63 = vshll.u32 %v1529_v2, 16 }
  0x34   : > { %v720_v61 = vrot.slane %v718_v55, 5  ;;  %v304_v0 = vshll.u32 %v205_v51, 16  ;;  %v309_v1 = vshrl.u32 %v1532_v50, 16  ;;  %v702_v4 = vrot.slane %v701_v58, 4 }
  0x35   : > { %v293_v3 = vsel %vm1486_vm3, %v288_v57, %v292_v38  ;;  %v715_v5 = vor.u32 %v714_v59, %v711_v54  ;;  %v297_v9 = vrot.slane %v295_v60, 4  ;;  %v300_v13 = vrot.slane %v298_v63, 5 }
  0x36   : > { %v1029_v12 = vcombine.low %v279_v52, %v293_v3  ;;  %v311_v14 = vrot.slane %v309_v1, 4  ;;  %v1036_v16 = vcombine.low %v1461_v7, %v1464_v8  ;;  %v707_v17 = vsel %vm1486_vm3, %v702_v4, %v706_v53  ;;  %v1079_v52 = vld [vmem:[%s1453_s11 + $0x44] sm:$0x1] }
  0x37   : > { %v716_v18 = vrot.slane %v715_v5, 4  ;;  %v312_v19 = vshll.u32 %v1532_v50, 16  ;;  %v318_v20 = vshll.u32 %v206_v62, 16  ;;  %v301_v21 = vor.u32 %v300_v13, %v297_v9 }
  0x38   : > { %1147 = vmatprep.mubr.msk.bf16.mxu1 %vm343_vm0, %v1029_v12  ;;  %v723_v23 = vshrl.u32 %v1072_v10, 16  ;;  %v726_v26 = vshll.u32 %v1072_v10, 16  ;;  %v732_v27 = vshll.u32 %v1073_v11, 16  ;;  %v306_v7 = vrot.slane %v304_v0, 5 }
  0x39   : > { %v721_v28 = vsel %vm1486_vm3, %v716_v18, %v720_v61  ;;  %v314_v8 = vrot.slane %v312_v19, 5  ;;  %v737_v29 = vshrl.u32 %v1074_v15, 16  ;;  %v302_v33 = vrot.slane %v301_v21, 4 }
  0x3a   : > { %v1083_v32 = vcombine.low %v707_v17, %v721_v28  ;;  %v725_v34 = vrot.slane %v723_v23, 4  ;;  %v728_v35 = vrot.slane %v726_v26, 5  ;;  %v320_v38 = vrot.slane %v318_v20, 5 }
  0x3b   : > { %v315_v37 = vor.u32 %v314_v8, %v311_v14  ;;  %v739_v39 = vrot.slane %v737_v29, 4  ;;  %v740_v40 = vshll.u32 %v1074_v15, 16  ;;  %v734_v43 = vrot.slane %v732_v27, 5 }
  0x3c   : > { %1174 = vmatmul.mubr.msk.bf16.vlgmr.msra.gmra.mrb[0].mxu0 %vm343_vm0, %v1083_v32  ;;  %v729_v42 = vor.u32 %v728_v35, %v725_v34  ;;  %v746_v44 = vshll.u32 %v1075_v22, 16  ;;  %v751_v45 = vshrl.u32 %v1076_v30, 16  ;;  %v307_v46 = vsel %vm1486_vm3, %v302_v33, %v306_v7 }
  0x3d   : > { %v316_v47 = vrot.slane %v315_v37, 4  ;;  %v742_v48 = vrot.slane %v740_v40, 5  ;;  %v754_v49 = vshll.u32 %v1076_v30, 16  ;;  %v760_v54 = vshll.u32 %v1077_v36, 16 }
  0x3e   : > { %v730_v51 = vrot.slane %v729_v42, 4  ;;  %v753_v53 = vrot.slane %v751_v45, 4  ;;  %v765_v55 = vshrl.u32 %v1078_v41, 16  ;;  %v748_v59 = vrot.slane %v746_v44, 5 }
  0x3f   : > { %v321_v57 = vsel %vm1486_vm3, %v316_v47, %v320_v38  ;;  %v743_v58 = vor.u32 %v742_v48, %v739_v39  ;;  %v756_v60 = vrot.slane %v754_v49, 5  ;;  %v768_v63 = vshll.u32 %v1078_v41, 16 }
  0x40   : > { %v1030_v61 = vcombine.low %v307_v46, %v321_v57  ;;  %v767_v62 = vrot.slane %v765_v55, 4  ;;  %v735_v0 = vsel %vm1486_vm3, %v730_v51, %v734_v43  ;;  %v774_v4 = vshll.u32 %v1079_v52, 16 }
  0x41   : > { %v744_v1 = vrot.slane %v743_v58, 4  ;;  %v757_v3 = vor.u32 %v756_v60, %v753_v53  ;;  %v762_v5 = vrot.slane %v760_v54, 5  ;;  %v770_v9 = vrot.slane %v768_v63, 5 }
  0x42   : > { %1148 = vmatmul.mubr.msk.bf16.gmra.mrb[4].mxu1 %vm343_vm0, %v1030_v61  ;;  %v776_v14 = vrot.slane %v774_v4, 5  ;;  %v1037_v18 = vcombine.low %v1475_v24, %v1478_v25  ;;  %v1038_v19 = vcombine.low %v1502_v56, %v1509_v6  ;;  %v1039_v21 = vcombine.low %v1529_v2, %v1532_v50 }
  0x43   : > { %v749_v10 = vsel %vm1486_vm3, %v744_v1, %v748_v59  ;;  %1153 = vmatprep.mubr.msk.bf16.mxu1 %vm343_vm0, %v1036_v16  ;;  %v758_v11 = vrot.slane %v757_v3, 4  ;;  %v771_v13 = vor.u32 %v770_v9, %v767_v62 }
  0x44   : > { %v1084_v12 = vcombine.low %v735_v0, %v749_v10 }
  0x45   : > { %v763_v15 = vsel %vm1486_vm3, %v758_v11, %v762_v5  ;;  %v772_v17 = vrot.slane %v771_v13, 4 }
  0x46   : > { %1177 = vmatprep.mubr.msk.bf16.mxu0 %vm343_vm0, %v1084_v12 }
  0x47   : > { %v777_v20 = vsel %vm1486_vm3, %v772_v17, %v776_v14 }
  0x48   : > { %v1085_v16 = vcombine.low %v763_v15, %v777_v20 }
  0x4a   : > { %1154 = vmatmul.mubr.msk.bf16.vlgmr.msra.gmra.mrb[0].mxu1 %vm343_vm0, %v1037_v18  ;;  %1178 = vmatmul.mubr.msk.bf16.gmra.mrb[4].mxu0 %vm343_vm0, %v1085_v16 }
  0x4b   : > { %1157 = vmatprep.mubr.msk.bf16.mxu1 %vm343_vm0, %v1038_v19 }
  0x52   : > { %1158 = vmatmul.mubr.msk.bf16.gmra.mrb[4].mxu1 %vm343_vm0, %v1039_v21 }
 0x10f   : > { %v1175_v24 = vpop.f32.mrb[0].mxu0 }
 0x110   : > { %v845_v25 = vpop.f32.mrb[1].mxu0 }
 0x111   : > { %v1176_v22 = vpop.f32.mrb[2].mxu0 }
 0x112   : > { %v848_v56 = vpop.f32.mrb[3].mxu0 }
 0x11d   : > { %v1155_v6 = vpop.f32.mrb[0].mxu1  ;;  %v1179_v23 = vpop.f32.mrb[4].mxu0 }
 0x11e   : > { %v1181_v26 = vadd.f32 %v1175_v24, %v1155_v6  ;;  %v493_v27 = vpop.f32.mrb[1].mxu1  ;;  %v861_v28 = vpop.f32.mrb[5].mxu0 }
 0x11f   : > { %v1182_v7 = vadd.f32 %v845_v25, %v493_v27  ;;  %v1156_v8 = vpop.f32.mrb[2].mxu1  ;;  %v1180_v50 = vpop.f32.mrb[6].mxu0 }
 0x120   : > { %v893_v2 = vadd.f32 %v1181_v26, %v1091_v31  ;;  %v1183_v29 = vadd.f32 %v1176_v22, %v1156_v8  ;;  %v496_v30 = vpop.f32.mrb[3].mxu1  ;;  %v864_v33 = vpop.f32.mrb[7].mxu0 }
 0x121   : > { %v891_v32 = vadd.f32 %v1182_v7, %v1091_v31  ;;  %v1184_v34 = vadd.f32 %v848_v56, %v496_v30 }
 0x122   : > { %v894_v35 = vadd.f32 %v1183_v29, %v1091_v31  ;;  %v901_v37 = vmax.f32 %v893_v2, 0.0 }
 0x123   : > { %v892_v36 = vadd.f32 %v1184_v34, %v1091_v31  ;;  %v899_v39 = vmax.f32 %v891_v32, 0.0 }
 0x124   : > { %v902_v38 = vmax.f32 %v894_v35, 0.0 }
 0x125   : > { %v900_v40 = vmax.f32 %v892_v36, 0.0  ;;  %v1159_v41 = vpop.f32.mrb[4].mxu1 }
 0x126   : > { %v1106_v42 = vpack.c.bf16 %v902_v38, %v901_v37  ;;  %v1185_v43 = vadd.f32 %v1179_v23, %v1159_v41  ;;  %v509_v44 = vpop.f32.mrb[5].mxu1 }
 0x127   : > { %v1101_v45 = vpack.c.bf16 %v900_v40, %v899_v39  ;;  %v1186_v46 = vadd.f32 %v861_v28, %v509_v44  ;;  %v1160_v47 = vpop.f32.mrb[6].mxu1 }
 0x128   : > { %1118 = vst [vmem:[%s177_s26 + $0x8] sm:$0xff] %v1106_v42   ;;  %v897_v48 = vadd.f32 %v1185_v43, %v1091_v31  ;;  %v1187_v49 = vadd.f32 %v1180_v50, %v1160_v47  ;;  %v512_v51 = vpop.f32.mrb[7].mxu1 }
 0x129   : > { %1102 = vst [vmem:[%s177_s26] sm:$0xff] %v1101_v45   ;;  %v895_v52 = vadd.f32 %v1186_v46, %v1091_v31  ;;  %v1188_v53 = vadd.f32 %v864_v33, %v512_v51 }
 0x12a   : > { %v898_v54 = vadd.f32 %v1187_v49, %v1091_v31  ;;  %v905_v57 = vmax.f32 %v897_v48, 0.0 }
 0x12b   : > { %v896_v55 = vadd.f32 %v1188_v53, %v1091_v31  ;;  %v903_v59 = vmax.f32 %v895_v52, 0.0 }
 0x12c   : > { %v906_v58 = vmax.f32 %v898_v54, 0.0 }
 0x12d   : > { %v904_v60 = vmax.f32 %v896_v55, 0.0 }
 0x12e   : > { %v1116_v61 = vpack.c.bf16 %v906_v58, %v905_v57 }
 0x12f   : > { %v1111_v62 = vpack.c.bf16 %v904_v60, %v903_v59 }
 0x130   : > { %1120 = vst [vmem:[%s177_s26 + $0x18] sm:$0xff] %v1116_v61  }
 0x131   : > { %1119 = vst [vmem:[%s177_s26 + $0x10] sm:$0xff] %v1111_v62  }
 0x132   : > { %1288 = shalt.err (!%p1285_p5)
}
 0x133   : > { %s1289_s9 = scalar_lea.hbm %s1596_s4, 512  ;;  %s1293_s18 = scalar_lea.hbm %s1651_s3, 1024 }
 0x134   : > { %p1290_p6 = scmp.ne.s32.totalorder %s1596_s4, %s1289_s9  ;;  %p1294_p10 = scmp.lt.u32.totalorder %s1596_s4, %s1651_s3 }
 0x135   : > { %p1295_p11 = scmp.lt.u32.totalorder %s1293_s18, %s1289_s9  ;;  %p1297_p13 = scmp.lt.u32.totalorder %s1289_s9, %s1596_s4 }
 0x136   : > { %p1291_p7 = pnand %p1290_p6, %p1418_p4 }
 0x137   : > { %p1296_p12 = por %p1295_p11, %p1294_p10 }
 0x138   : > { %p1292_p9 = pneg %p1291_p7 }
 0x139   : > { %p1298_p0 = por %p1297_p13, %p1296_p12 }
 0x13b   : > { %p1299_p1 = pnand %p1298_p0, %p1292_p9 }
 0x13d   : > { %1302 = shalt.err (!%p1299_p1)
}
 0x13e   : > { %s1356_s23 = smov 64   ;;  %s1357_s26 = smov 4  }
 0x13f   : > { %1206 = dma.vmem_to_hbm [thread:$0]  (%p1418_p4), %s1598_s27, 512, %s1596_s4, %s1602_s15, %s1356_s23, %s1356_s23, %s1357_s26  }
 0x140 PF: > { %p1212_p2 = scmp.ge.s32.totalorder %s1353_s17, 2  ;;  %s954_s28 = sand.u32 1, %s1333_s12  }
 0x141   : > { %s955_s29 = scalar_lea.sflag [#allocation3], %s954_s28 }
 0x142   : > { %p1209_p3 = pnand %p1212_p2, %p1425_p8 }
 0x144   : > { %1328 = dma.done.wait (!%p1209_p3), %s955_s29, 512  }
 0x145   : > { %1330 = vsyncadd (!%p1209_p3), %s955_s29, 4294966784  ;;  %s16_s17 = sadd.s32 1, %s1353_s17   ;;  %s1656_s12 = smov %s1337_s13 }
 0x146   : > { %p13_p5 = scmp.ge.s32.totalorder %s16_s17, 4   ;;  %s1657_s13 = smov %s1341_s14 }
 0x147   : > { %s1658_s14 = smov %s1431_s25  ;;  %s1659_s15 = smov %s1349_s16 }
 0x148   : > { %s1660_s16 = smov %s1662_s20  ;;  %15 = sbr.rel (!%p13_p5) target bundleno = 4 (0x4), region = 72 }
 0x14f   :  { %960 = vsyncpa [#allocation3], 1 }
 0x150   :  { %962 = vsyncpa [#allocation3 + $0x1], 1 }

// kernel: tpu_custom_call.1
= control target key start
LH: loop header
LB: loop body
LE: loop exit
PB: predicated region body
PF: predicated region fallthrough
CT: control target
= control target key end

     0   :  { %8 = vsyncpa [#allocation3], 0  ;;  %s1648_s0 = inlined_call_operand.vmem [shape: bf16[2,9,9,16], index: 0, kind: input, shape index: {}]   ;;  %s1649_s1 = inlined_call_operand.vmem [shape: bf16[4,16,128], index: 1, kind: input, shape index: {}]   ;;  %s1650_s2 = inlined_call_operand.vmem [shape: f32[1,128], index: 2, kind: input, shape index: {}]   ;;  %s1651_s3 = inlined_call_operand.hbm [shape: bf16[2,8,8,128], index: 3, kind: output, shape index: {}]  }
   0x1   :  { %10 = vsyncpa [#allocation3 + $0x1], 0  ;;  %s1378_s12 = smov 0   ;;  %s1380_s13 = smov 0  }
   0x2   :  { %s1382_s14 = smov 0   ;;  %s1384_s15 = smov 0  }
   0x3   :  { %s1386_s16 = smov 0   ;;  %s1388_s17 = smov 0  }
   0x4 LB: > { %s1018_s18 = sadd.s32 4294967295, %s1353_s17   ;;  %s1019_s19 = sadd.s32 4294967294, %s1353_s17   ;;  %s1353_s17 = sphi %s1388_s17, %s16_s17   ;;  %s1349_s16 = sphi %s1386_s16, %s1660_s16   ;;  %s1345_s15 = sphi %s1384_s15, %s1659_s15   ;;  %s1341_s14 = sphi %s1382_s14, %s1658_s14   ;;  %s1337_s13 = sphi %s1380_s13, %s1657_s13   ;;  %s1333_s12 = sphi %s1378_s12, %s1656_s12  }
   0x5   : > { %s28_s20 = sadd.s32 1, %s1349_s16  ;;  %s105_s21 = sadd.s32 1, %s1341_s14 }
   0x6   : > { %p30_p0 = scmp.ge.s32.totalorder %s28_s20, 2  ;;  %p115_p1 = scmp.ne.s32.totalorder %s1341_s14, %s1337_s13 }
   0x7   : > { %p116_p2 = scmp.eq.s32.totalorder %s1018_s18, 1  ;;  %p121_p3 = scmp.ne.s32.totalorder %s1337_s13, %s1333_s12 }
   0x8   : > { %s1662_s20 = smov (%p30_p0, %s28_s20), 0  ;;  %p122_p5 = scmp.eq.s32.totalorder %s1019_s19, 1 }
   0x9   : > { %p1418_p4 = por %p116_p2, %p115_p1  ;;  %s100_s23 = ssub.s32 %s1349_s16, %s1662_s20 }
   0xa   : > { %p1022_p6 = scmp.ge.s32.totalorder %s1353_s17, 1  ;;  %p103_p7 = scmp.eq.s32.totalorder %s100_s23, 0 }
   0xb   : > { %p1425_p8 = por %p122_p5, %p121_p3  ;;  %p154_p9 = scmp.lt.s32.totalorder %s1353_s17, 3 }
   0xc   : > { %s1431_s25 = scalar_select %p103_p7, %s1341_s14, %s105_s21  }
   0xd   : > { %p155_p10 = pnand %p1022_p6, %p154_p9 }
   0xe   : > { %v1263_v0 = vld [vmem:[%s1649_s1 + $0x10] sm:$0xff] (!%p155_p10)   ;;  %p178_p11 = scmp.lt.s32.totalorder (!%p155_p10), %s1345_s15, 1  ;;  %v1266_v1 = vld [vmem:[%s1649_s1 + $0x8] sm:$0xff] (!%p155_p10)   ;;  %v1444_v2 = vld [vmem:[%s1649_s1] sm:$0xff] (!%p155_p10)   ;;  %vm343_vm0 = vcmask (!%p155_p10), 130048   ;;  %s175_s21 = sand.u32 (!%p155_p10), 1, %s1337_s13  }
   0xf   : > { %158 = sbr.rel (%p155_p10) target bundleno = 320 (0x140), region = 32  ;;  %1161 = vmatprep.subr.bf16.mxu0 (!%p155_p10), %v1263_v0  ;;  %1141 = vmatprep.subr.bf16.mxu1 (!%p155_p10), %v1266_v1  ;;  %v1270_v3 = vld [vmem:[%s1649_s1 + $0x18] sm:$0xff] (!%p155_p10)   ;;  %vm207_vm1 = vsmask.f32 (!%p155_p10), 3328  ;;  %vm208_vm2 = vsmask.f32 (!%p155_p10), 7440 }
  0x10   : > { %1162 = vmatpush3.bf16.msra.mxu0 (!%p155_p10), %v1263_v0  ;;  %1142 = vmatpush3.bf16.msra.mxu1 (!%p155_p10), %v1266_v1  ;;  %vm1486_vm3 = vmor (!%p155_p10), %vm207_vm1, %vm208_vm2  ;;  %v1091_v31 = vld [vmem:[%s1650_s2] ss:$0 sm:$0xff] (!%p155_p10)  ;;  %s1023_s23 = sshll.u32 (!%p155_p10), %s175_s21, 5  ;;  %s1097_s28 = sshll.u32 (!%p155_p10), %s1345_s15, 9 }
  0x11   : > { %1151 = vmatprep.subr.bf16.mxu1 (!%p155_p10), %v1444_v2  ;;  %1171 = vmatprep.subr.bf16.mxu0 (!%p155_p10), %v1270_v3  ;;  %s177_s26 = scalar_lea.vmem (!%p155_p10), [#allocation2], %s1023_s23  ;;  %s1596_s4 = scalar_lea.hbm (!%p155_p10), %s1651_s3, %s1097_s28 }
  0x12   : > { %s939_s27 = sshll.u32 (!%p155_p10), %s177_s26, 4  ;;  %s1598_s27 = int_to_ptr.vmem [resolvable:$true] %s939_s27 }
  0x13   : > { %s1275_s5 = scalar_lea.vmem (!%p155_p10), %s1598_s27, 512 }
  0x14   : > { %p1276_p12 = scmp.ne.s32.totalorder (!%p155_p10), %s1598_s27, %s1275_s5 }
  0x16   : > { %s179_s30 = scalar_select %p178_p11, %s1345_s15, 1 }
  0x17   : > { %s1602_s15 = scalar_lea.sflag [#allocation3], %s175_s21  ;;  %p1277_p13 = pnand %p1276_p12, %p1418_p4 }
  0x18   : > { %s1205_s6 = smul.u32 72, %s179_s30 }
  0x19   : > { %p1278_p0 = pneg %p1277_p13 }
  0x1a   : > { %s1453_s11 = scalar_lea.vmem %s1648_s0, %s1205_s6  ;;  %s1355_s6 = smov [#allocation2]  }
  0x1b   : > { %v1264_v4 = vld [vmem:[%s1453_s11 + $0x8] ss:$8 sps:$4 sm:$0xff]   ;;  %v1265_v5 = vld [vmem:[%s1453_s11 + $0x18] ss:$8 sps:$4 sm:$0xff]   ;;  %v199_v9 = vld [vmem:[%s1453_s11 + $0x4] sm:$0x1] }
  0x1c   : > { %1163 = vmatprep.mubr.msk.bf16.mxu0 %vm343_vm0, %v1264_v4  ;;  %v1267_v6 = vld [vmem:[%s1453_s11 + $0x28] ss:$8 sps:$4 sm:$0xff]   ;;  %v1461_v7 = vld [vmem:[%s1453_s11] sm:$0xf]  ;;  %v200_v10 = vld [vmem:[%s1453_s11 + $0xc] sm:$0x1] }
  0x1d   : > { %1164 = vmatmul.mubr.msk.bf16.vlgmr.msra.gmra.mrb[0].mxu0 %vm343_vm0, %v1265_v5  ;;  %v1464_v8 = vld [vmem:[%s1453_s11 + $0x8] sm:$0xf]  ;;  %v211_v11 = vshrl.u32 %v1461_v7, 16  ;;  %v214_v12 = vshll.u32 %v1461_v7, 16  ;;  %v220_v13 = vshll.u32 %v199_v9, 16  ;;  %v234_v16 = vshll.u32 %v200_v10, 16 }
  0x1e   : > { %1167 = vmatprep.mubr.msk.bf16.mxu0 %vm343_vm0, %v1267_v6  ;;  %v225_v14 = vshrl.u32 %v1464_v8, 16  ;;  %1172 = vmatpush3.bf16.msra.mxu0 %v1270_v3  ;;  %v228_v15 = vshll.u32 %v1464_v8, 16  ;;  %v1269_v21 = vld [vmem:[%s1453_s11 + $0x38] ss:$8 sps:$4 sm:$0xff]   ;;  %v1475_v24 = vld [vmem:[%s1453_s11 + $0x10] sm:$0xf] }
  0x1f   : > { %v213_v17 = vrot.slane %v211_v11, 4  ;;  %v216_v18 = vrot.slane %v214_v12, 5  ;;  %v222_v19 = vrot.slane %v220_v13, 5  ;;  %v236_v23 = vrot.slane %v234_v16, 5  ;;  %v1478_v25 = vld [vmem:[%s1453_s11 + $0x18] sm:$0xf] }
  0x20   : > { %v227_v20 = vrot.slane %v225_v14, 4  ;;  %v230_v22 = vrot.slane %v228_v15, 5  ;;  %v201_v27 = vld [vmem:[%s1453_s11 + $0x14] sm:$0x1]  ;;  %v202_v28 = vld [vmem:[%s1453_s11 + $0x1c] sm:$0x1] }
  0x21   : > { %v217_v26 = vor.u32 %v216_v18, %v213_v17  ;;  %v239_v29 = vshrl.u32 %v1475_v24, 16  ;;  %v242_v30 = vshll.u32 %v1475_v24, 16  ;;  %v248_v33 = vshll.u32 %v201_v27, 16  ;;  %v1064_v36 = vld [vmem:[%s1453_s11 + $0x8] sm:$0xf]  ;;  %s1279_s7 = sshll.u32 %s1355_s6, 4  ;;  %s1280_s7 = int_to_ptr.vmem [resolvable:$false] %s1279_s7 }
  0x22   : > { %v231_v32 = vor.u32 %v230_v22, %v227_v20  ;;  %v253_v34 = vshrl.u32 %v1478_v25, 16  ;;  %v256_v35 = vshll.u32 %v1478_v25, 16  ;;  %v262_v40 = vshll.u32 %v202_v28, 16  ;;  %v1065_v41 = vld [vmem:[%s1453_s11 + $0xc] sm:$0x1]  ;;  %s1281_s8 = scalar_lea.vmem %s1280_s7, 1024  ;;  %p1282_p1 = scmp.lt.s32.totalorder %s1598_s27, %s1280_s7 }
  0x23   : > { %v218_v37 = vrot.slane %v217_v26, 4  ;;  %v241_v38 = vrot.slane %v239_v29, 4  ;;  %v244_v39 = vrot.slane %v242_v30, 5  ;;  %v250_v43 = vrot.slane %v248_v33, 5  ;;  %v1066_v46 = vld [vmem:[%s1453_s11 + $0x10] sm:$0xf]  ;;  %p1283_p2 = scmp.lt.s32.totalorder %s1281_s8, %s1275_s5 }
  0x24   : > { %v232_v42 = vrot.slane %v231_v32, 4  ;;  %v255_v44 = vrot.slane %v253_v34, 4  ;;  %v258_v45 = vrot.slane %v256_v35, 5  ;;  %v264_v49 = vrot.slane %v262_v40, 5  ;;  %v1067_v53 = vld [vmem:[%s1453_s11 + $0x14] sm:$0x1] }
  0x25   : > { %1168 = vmatmul.mubr.msk.bf16.gmra.mrb[4].mxu0 %vm343_vm0, %v1269_v21  ;;  %v223_v47 = vsel %vm1486_vm3, %v218_v37, %v222_v19  ;;  %v245_v48 = vor.u32 %v244_v39, %v241_v38  ;;  %v667_v50 = vshrl.u32 %v1064_v36, 16  ;;  %v670_v54 = vshll.u32 %v1064_v36, 16  ;;  %v1502_v56 = vld [vmem:[%s1453_s11 + $0x20] sm:$0xf]  ;;  %v203_v1 = vld [vmem:[%s1453_s11 + $0x24] sm:$0x1]  ;;  %p1284_p3 = por %p1283_p2, %p1282_p1 }
  0x26   : > { %v237_v51 = vsel %vm1486_vm3, %v232_v42, %v236_v23  ;;  %v259_v52 = vor.u32 %v258_v45, %v255_v44  ;;  %v676_v55 = vshll.u32 %v1065_v41, 16  ;;  %v681_v60 = vshrl.u32 %v1066_v46, 16  ;;  %v1509_v6 = vld [vmem:[%s1453_s11 + $0x28] sm:$0xf]  ;;  %v204_v13 = vld [vmem:[%s1453_s11 + $0x2c] sm:$0x1] }
  0x27   : > { %v1027_v57 = vcombine.low %v223_v47, %v237_v51  ;;  %v246_v58 = vrot.slane %v245_v48, 4  ;;  %v669_v59 = vrot.slane %v667_v50, 4  ;;  %v672_v62 = vrot.slane %v670_v54, 5  ;;  %v1068_v15 = vld [vmem:[%s1453_s11 + $0x18] sm:$0xf]  ;;  %p1285_p5 = pnand %p1284_p3, %p1278_p0 }
  0x28   : > { %v260_v61 = vrot.slane %v259_v52, 4  ;;  %v678_v63 = vrot.slane %v676_v55, 5  ;;  %v684_v0 = vshll.u32 %v1066_v46, 16  ;;  %v683_v4 = vrot.slane %v681_v60, 4  ;;  %v1069_v26 = vld [vmem:[%s1453_s11 + $0x1c] sm:$0x1] }
  0x29   : > { %1143 = vmatprep.mubr.msk.bf16.mxu1 %vm343_vm0, %v1027_v57  ;;  %v251_v3 = vsel %vm1486_vm3, %v246_v58, %v250_v43  ;;  %v690_v5 = vshll.u32 %v1067_v53, 16  ;;  %v267_v9 = vshrl.u32 %v1502_v56, 16  ;;  %v673_v11 = vor.u32 %v672_v62, %v669_v59  ;;  %v1070_v30 = vld [vmem:[%s1453_s11 + $0x20] sm:$0xf]  ;;  %v1071_v39 = vld [vmem:[%s1453_s11 + $0x24] sm:$0x1] }
  0x2a   : > { %v265_v10 = vsel %vm1486_vm3, %v260_v61, %v264_v49  ;;  %v686_v12 = vrot.slane %v684_v0, 5  ;;  %v270_v14 = vshll.u32 %v1502_v56, 16  ;;  %v276_v19 = vshll.u32 %v203_v1, 16  ;;  %v1532_v50 = vld [vmem:[%s1453_s11 + $0x38] sm:$0xf] }
  0x2b   : > { %v1028_v16 = vcombine.low %v251_v3, %v265_v10  ;;  %v692_v17 = vrot.slane %v690_v5, 5  ;;  %v269_v18 = vrot.slane %v267_v9, 4  ;;  %v674_v20 = vrot.slane %v673_v11, 4  ;;  %v205_v51 = vld [vmem:[%s1453_s11 + $0x34] sm:$0x1] }
  0x2c   : > { %v687_v21 = vor.u32 %v686_v12, %v683_v4  ;;  %v272_v22 = vrot.slane %v270_v14, 5  ;;  %v281_v23 = vshrl.u32 %v1509_v6, 16  ;;  %v278_v27 = vrot.slane %v276_v19, 5  ;;  %v206_v62 = vld [vmem:[%s1453_s11 + $0x3c] sm:$0x1] }
  0x2d   : > { %1144 = vmatmul.mubr.msk.bf16.vlgmr.msra.gmra.mrb[0].mxu1 %vm343_vm0, %v1028_v16  ;;  %v284_v28 = vshll.u32 %v1509_v6, 16  ;;  %v290_v29 = vshll.u32 %v204_v13, 16  ;;  %v695_v32 = vshrl.u32 %v1068_v15, 16  ;;  %v679_v33 = vsel %vm1486_vm3, %v674_v20, %v678_v63  ;;  %v1072_v10 = vld [vmem:[%s1453_s11 + $0x28] sm:$0xf] }
  0x2e   : > { %1152 = vmatpush3.bf16.msra.mxu1 %v1444_v2  ;;  %v688_v34 = vrot.slane %v687_v21, 4  ;;  %v273_v35 = vor.u32 %v272_v22, %v269_v18  ;;  %v283_v36 = vrot.slane %v281_v23, 4  ;;  %v698_v41 = vshll.u32 %v1068_v15, 16  ;;  %v1529_v2 = vld [vmem:[%s1453_s11 + $0x30] sm:$0xf] }
  0x2f   : > { %v286_v37 = vrot.slane %v284_v28, 5  ;;  %v292_v38 = vrot.slane %v290_v29, 5  ;;  %v697_v40 = vrot.slane %v695_v32, 4  ;;  %v704_v44 = vshll.u32 %v1069_v26, 16  ;;  %v1073_v11 = vld [vmem:[%s1453_s11 + $0x2c] sm:$0x1] }
  0x30   : > { %v693_v42 = vsel %vm1486_vm3, %v688_v34, %v692_v17  ;;  %v274_v43 = vrot.slane %v273_v35, 4  ;;  %v709_v45 = vshrl.u32 %v1070_v30, 16  ;;  %v700_v48 = vrot.slane %v698_v41, 5  ;;  %v1074_v15 = vld [vmem:[%s1453_s11 + $0x30] sm:$0xf] }
  0x31   : > { %v1082_v46 = vcombine.low %v679_v33, %v693_v42  ;;  %v287_v47 = vor.u32 %v286_v37, %v283_v36  ;;  %v712_v49 = vshll.u32 %v1070_v30, 16  ;;  %v706_v53 = vrot.slane %v704_v44, 5  ;;  %v1075_v22 = vld [vmem:[%s1453_s11 + $0x34] sm:$0x1]  ;;  %v1076_v30 = vld [vmem:[%s1453_s11 + $0x38] sm:$0xf] }
  0x32   : > { %v279_v52 = vsel %vm1486_vm3, %v274_v43, %v278_v27  ;;  %v711_v54 = vrot.slane %v709_v45, 4  ;;  %v718_v55 = vshll.u32 %v1071_v39, 16  ;;  %v701_v58 = vor.u32 %v700_v48, %v697_v40  ;;  %v1077_v36 = vld [vmem:[%s1453_s11 + $0x3c] sm:$0x1]  ;;  %v1078_v41 = vld [vmem:[%s1453_s11 + $0x40] sm:$0xf] }
  0x33   : > { %1173 = vmatprep.mubr.msk.bf16.mxu0 %vm343_vm0, %v1082_v46  ;;  %v288_v57 = vrot.slane %v287_v47, 4  ;;  %v714_v59 = vrot.slane %v712_v49, 5  ;;  %v295_v60 = vshrl.u32 %v1529_v2, 16  ;;  %v298_v63 = vshll.u32 %v1529_v2, 16 }
  0x34   : > { %v720_v61 = vrot.slane %v718_v55, 5  ;;  %v304_v0 = vshll.u32 %v205_v51, 16  ;;  %v309_v1 = vshrl.u32 %v1532_v50, 16  ;;  %v702_v4 = vrot.slane %v701_v58, 4 }
  0x35   : > { %v293_v3 = vsel %vm1486_vm3, %v288_v57, %v292_v38  ;;  %v715_v5 = vor.u32 %v714_v59, %v711_v54  ;;  %v297_v9 = vrot.slane %v295_v60, 4  ;;  %v300_v13 = vrot.slane %v298_v63, 5 }
  0x36   : > { %v1029_v12 = vcombine.low %v279_v52, %v293_v3  ;;  %v311_v14 = vrot.slane %v309_v1, 4  ;;  %v1036_v16 = vcombine.low %v1461_v7, %v1464_v8  ;;  %v707_v17 = vsel %vm1486_vm3, %v702_v4, %v706_v53  ;;  %v1079_v52 = vld [vmem:[%s1453_s11 + $0x44] sm:$0x1] }
  0x37   : > { %v716_v18 = vrot.slane %v715_v5, 4  ;;  %v312_v19 = vshll.u32 %v1532_v50, 16  ;;  %v318_v20 = vshll.u32 %v206_v62, 16  ;;  %v301_v21 = vor.u32 %v300_v13, %v297_v9 }
  0x38   : > { %1147 = vmatprep.mubr.msk.bf16.mxu1 %vm343_vm0, %v1029_v12  ;;  %v723_v23 = vshrl.u32 %v1072_v10, 16  ;;  %v726_v26 = vshll.u32 %v1072_v10, 16  ;;  %v732_v27 = vshll.u32 %v1073_v11, 16  ;;  %v306_v7 = vrot.slane %v304_v0, 5 }
  0x39   : > { %v721_v28 = vsel %vm1486_vm3, %v716_v18, %v720_v61  ;;  %v314_v8 = vrot.slane %v312_v19, 5  ;;  %v737_v29 = vshrl.u32 %v1074_v15, 16  ;;  %v302_v33 = vrot.slane %v301_v21, 4 }
  0x3a   : > { %v1083_v32 = vcombine.low %v707_v17, %v721_v28  ;;  %v725_v34 = vrot.slane %v723_v23, 4  ;;  %v728_v35 = vrot.slane %v726_v26, 5  ;;  %v320_v38 = vrot.slane %v318_v20, 5 }
  0x3b   : > { %v315_v37 = vor.u32 %v314_v8, %v311_v14  ;;  %v739_v39 = vrot.slane %v737_v29, 4  ;;  %v740_v40 = vshll.u32 %v1074_v15, 16  ;;  %v734_v43 = vrot.slane %v732_v27, 5 }
  0x3c   : > { %1174 = vmatmul.mubr.msk.bf16.vlgmr.msra.gmra.mrb[0].mxu0 %vm343_vm0, %v1083_v32  ;;  %v729_v42 = vor.u32 %v728_v35, %v725_v34  ;;  %v746_v44 = vshll.u32 %v1075_v22, 16  ;;  %v751_v45 = vshrl.u32 %v1076_v30, 16  ;;  %v307_v46 = vsel %vm1486_vm3, %v302_v33, %v306_v7 }
  0x3d   : > { %v316_v47 = vrot.slane %v315_v37, 4  ;;  %v742_v48 = vrot.slane %v740_v40, 5  ;;  %v754_v49 = vshll.u32 %v1076_v30, 16  ;;  %v760_v54 = vshll.u32 %v1077_v36, 16 }
  0x3e   : > { %v730_v51 = vrot.slane %v729_v42, 4  ;;  %v753_v53 = vrot.slane %v751_v45, 4  ;;  %v765_v55 = vshrl.u32 %v1078_v41, 16  ;;  %v748_v59 = vrot.slane %v746_v44, 5 }
  0x3f   : > { %v321_v57 = vsel %vm1486_vm3, %v316_v47, %v320_v38  ;;  %v743_v58 = vor.u32 %v742_v48, %v739_v39  ;;  %v756_v60 = vrot.slane %v754_v49, 5  ;;  %v768_v63 = vshll.u32 %v1078_v41, 16 }
  0x40   : > { %v1030_v61 = vcombine.low %v307_v46, %v321_v57  ;;  %v767_v62 = vrot.slane %v765_v55, 4  ;;  %v735_v0 = vsel %vm1486_vm3, %v730_v51, %v734_v43  ;;  %v774_v4 = vshll.u32 %v1079_v52, 16 }
  0x41   : > { %v744_v1 = vrot.slane %v743_v58, 4  ;;  %v757_v3 = vor.u32 %v756_v60, %v753_v53  ;;  %v762_v5 = vrot.slane %v760_v54, 5  ;;  %v770_v9 = vrot.slane %v768_v63, 5 }
  0x42   : > { %1148 = vmatmul.mubr.msk.bf16.gmra.mrb[4].mxu1 %vm343_vm0, %v1030_v61  ;;  %v776_v14 = vrot.slane %v774_v4, 5  ;;  %v1037_v18 = vcombine.low %v1475_v24, %v1478_v25  ;;  %v1038_v19 = vcombine.low %v1502_v56, %v1509_v6  ;;  %v1039_v21 = vcombine.low %v1529_v2, %v1532_v50 }
  0x43   : > { %v749_v10 = vsel %vm1486_vm3, %v744_v1, %v748_v59  ;;  %1153 = vmatprep.mubr.msk.bf16.mxu1 %vm343_vm0, %v1036_v16  ;;  %v758_v11 = vrot.slane %v757_v3, 4  ;;  %v771_v13 = vor.u32 %v770_v9, %v767_v62 }
  0x44   : > { %v1084_v12 = vcombine.low %v735_v0, %v749_v10 }
  0x45   : > { %v763_v15 = vsel %vm1486_vm3, %v758_v11, %v762_v5  ;;  %v772_v17 = vrot.slane %v771_v13, 4 }
  0x46   : > { %1177 = vmatprep.mubr.msk.bf16.mxu0 %vm343_vm0, %v1084_v12 }
  0x47   : > { %v777_v20 = vsel %vm1486_vm3, %v772_v17, %v776_v14 }
  0x48   : > { %v1085_v16 = vcombine.low %v763_v15, %v777_v20 }
  0x4a   : > { %1154 = vmatmul.mubr.msk.bf16.vlgmr.msra.gmra.mrb[0].mxu1 %vm343_vm0, %v1037_v18  ;;  %1178 = vmatmul.mubr.msk.bf16.gmra.mrb[4].mxu0 %vm343_vm0, %v1085_v16 }
  0x4b   : > { %1157 = vmatprep.mubr.msk.bf16.mxu1 %vm343_vm0, %v1038_v19 }
  0x52   : > { %1158 = vmatmul.mubr.msk.bf16.gmra.mrb[4].mxu1 %vm343_vm0, %v1039_v21 }
 0x10f   : > { %v1175_v24 = vpop.f32.mrb[0].mxu0 }
 0x110   : > { %v845_v25 = vpop.f32.mrb[1].mxu0 }
 0x111   : > { %v1176_v22 = vpop.f32.mrb[2].mxu0 }
 0x112   : > { %v848_v56 = vpop.f32.mrb[3].mxu0 }
 0x11d   : > { %v1155_v6 = vpop.f32.mrb[0].mxu1  ;;  %v1179_v23 = vpop.f32.mrb[4].mxu0 }
 0x11e   : > { %v1181_v26 = vadd.f32 %v1175_v24, %v1155_v6  ;;  %v493_v27 = vpop.f32.mrb[1].mxu1  ;;  %v861_v28 = vpop.f32.mrb[5].mxu0 }
 0x11f   : > { %v1182_v7 = vadd.f32 %v845_v25, %v493_v27  ;;  %v1156_v8 = vpop.f32.mrb[2].mxu1  ;;  %v1180_v50 = vpop.f32.mrb[6].mxu0 }
 0x120   : > { %v893_v2 = vadd.f32 %v1181_v26, %v1091_v31  ;;  %v1183_v29 = vadd.f32 %v1176_v22, %v1156_v8  ;;  %v496_v30 = vpop.f32.mrb[3].mxu1  ;;  %v864_v33 = vpop.f32.mrb[7].mxu0 }
 0x121   : > { %v891_v32 = vadd.f32 %v1182_v7, %v1091_v31  ;;  %v1184_v34 = vadd.f32 %v848_v56, %v496_v30 }
 0x122   : > { %v894_v35 = vadd.f32 %v1183_v29, %v1091_v31  ;;  %v901_v37 = vmax.f32 %v893_v2, 0.0 }
 0x123   : > { %v892_v36 = vadd.f32 %v1184_v34, %v1091_v31  ;;  %v899_v39 = vmax.f32 %v891_v32, 0.0 }
 0x124   : > { %v902_v38 = vmax.f32 %v894_v35, 0.0 }
 0x125   : > { %v900_v40 = vmax.f32 %v892_v36, 0.0  ;;  %v1159_v41 = vpop.f32.mrb[4].mxu1 }
 0x126   : > { %v1106_v42 = vpack.c.bf16 %v902_v38, %v901_v37  ;;  %v1185_v43 = vadd.f32 %v1179_v23, %v1159_v41  ;;  %v509_v44 = vpop.f32.mrb[5].mxu1 }
 0x127   : > { %v1101_v45 = vpack.c.bf16 %v900_v40, %v899_v39  ;;  %v1186_v46 = vadd.f32 %v861_v28, %v509_v44  ;;  %v1160_v47 = vpop.f32.mrb[6].mxu1 }
 0x128   : > { %1118 = vst [vmem:[%s177_s26 + $0x8] sm:$0xff] %v1106_v42   ;;  %v897_v48 = vadd.f32 %v1185_v43, %v1091_v31  ;;  %v1187_v49 = vadd.f32 %v1180_v50, %v1160_v47  ;;  %v512_v51 = vpop.f32.mrb[7].mxu1 }
 0x129   : > { %1102 = vst [vmem:[%s177_s26] sm:$0xff] %v1101_v45   ;;  %v895_v52 = vadd.f32 %v1186_v46, %v1091_v31  ;;  %v1188_v53 = vadd.f32 %v864_v33, %v512_v51 }
 0x12a   : > { %v898_v54 = vadd.f32 %v1187_v49, %v1091_v31  ;;  %v905_v57 = vmax.f32 %v897_v48, 0.0 }
 0x12b   : > { %v896_v55 = vadd.f32 %v1188_v53, %v1091_v31  ;;  %v903_v59 = vmax.f32 %v895_v52, 0.0 }
 0x12c   : > { %v906_v58 = vmax.f32 %v898_v54, 0.0 }
 0x12d   : > { %v904_v60 = vmax.f32 %v896_v55, 0.0 }
 0x12e   : > { %v1116_v61 = vpack.c.bf16 %v906_v58, %v905_v57 }
 0x12f   : > { %v1111_v62 = vpack.c.bf16 %v904_v60, %v903_v59 }
 0x130   : > { %1120 = vst [vmem:[%s177_s26 + $0x18] sm:$0xff] %v1116_v61  }
 0x131   : > { %1119 = vst [vmem:[%s177_s26 + $0x10] sm:$0xff] %v1111_v62  }
 0x132   : > { %1288 = shalt.err (!%p1285_p5)
}
 0x133   : > { %s1289_s9 = scalar_lea.hbm %s1596_s4, 512  ;;  %s1293_s18 = scalar_lea.hbm %s1651_s3, 1024 }
 0x134   : > { %p1290_p6 = scmp.ne.s32.totalorder %s1596_s4, %s1289_s9  ;;  %p1294_p10 = scmp.lt.u32.totalorder %s1596_s4, %s1651_s3 }
 0x135   : > { %p1295_p11 = scmp.lt.u32.totalorder %s1293_s18, %s1289_s9  ;;  %p1297_p13 = scmp.lt.u32.totalorder %s1289_s9, %s1596_s4 }
 0x136   : > { %p1291_p7 = pnand %p1290_p6, %p1418_p4 }
 0x137   : > { %p1296_p12 = por %p1295_p11, %p1294_p10 }
 0x138   : > { %p1292_p9 = pneg %p1291_p7 }
 0x139   : > { %p1298_p0 = por %p1297_p13, %p1296_p12 }
 0x13b   : > { %p1299_p1 = pnand %p1298_p0, %p1292_p9 }
 0x13d   : > { %1302 = shalt.err (!%p1299_p1)
}
 0x13e   : > { %s1356_s23 = smov 64   ;;  %s1357_s26 = smov 4  }
 0x13f   : > { %1206 = dma.vmem_to_hbm [thread:$0]  (%p1418_p4), %s1598_s27, 512, %s1596_s4, %s1602_s15, %s1356_s23, %s1356_s23, %s1357_s26  }
 0x140 PF: > { %p1212_p2 = scmp.ge.s32.totalorder %s1353_s17, 2  ;;  %s954_s28 = sand.u32 1, %s1333_s12  }
 0x141   : > { %s955_s29 = scalar_lea.sflag [#allocation3], %s954_s28 }
 0x142   : > { %p1209_p3 = pnand %p1212_p2, %p1425_p8 }
 0x144   : > { %1328 = dma.done.wait (!%p1209_p3), %s955_s29, 512  }
 0x145   : > { %1330 = vsyncadd (!%p1209_p3), %s955_s29, 4294966784  ;;  %s16_s17 = sadd.s32 1, %s1353_s17   ;;  %s1656_s12 = smov %s1337_s13 }
 0x146   : > { %p13_p5 = scmp.ge.s32.totalorder %s16_s17, 4   ;;  %s1657_s13 = smov %s1341_s14 }
 0x147   : > { %s1658_s14 = smov %s1431_s25  ;;  %s1659_s15 = smov %s1349_s16 }
 0x148   : > { %s1660_s16 = smov %s1662_s20  ;;  %15 = sbr.rel (!%p13_p5) target bundleno = 4 (0x4), region = 72 }
 0x14f   :  { %960 = vsyncpa [#allocation3], 1 }
 0x150   :  { %962 = vsyncpa [#allocation3 + $0x1], 1 }

</bundles_post_ra>
